<compile_context>
chip_gen: v7x
topology: tpu7x:2x2x1
jax: 0.10.0
libtpu: 0.0.40
codegen_flags: <defaults>
</compile_context>

<pallas_src>
import jax
import jax.numpy as jnp
from jax import lax
from jax.experimental import pallas as pl
from jax.experimental.pallas import tpu as pltpu


def _dwconv_kernel(x_ref, w_ref, b_ref, o_ref):
    # x_ref: (1, H+2, W+2, Cb)  zero-haloed NHWC input block
    # w_ref: (9, Cb)            per-channel taps, row index = kh*3 + kw
    # b_ref: (1, Cb)            per-channel bias (f32)
    # o_ref: (1, H, W, Cb)      output block
    H = o_ref.shape[1]
    W = o_ref.shape[2]

    acc = None
    for kh in range(3):
        for kw in range(3):
            # Nine shifted (H, W, Cb) windows read directly from the ref
            # (no padded scratch copy, no full-window f32 temporaries kept live).
            win = x_ref[0, kh:kh + H, kw:kw + W, :]
            tap = w_ref[kh * 3 + kw, :][None, None, :]
            contrib = (win * tap).astype(jnp.float32)   # mul in input dtype, acc in f32
            acc = contrib if acc is None else acc + contrib
    acc = acc + b_ref[0, :][None, None, :]               # f32 bias, broadcast over (H, W)
    o_ref[0] = acc.astype(o_ref.dtype)


def _round_up(v, m):
    return ((v + m - 1) // m) * m


def _padded_pipeline_bytes(cb, C, H, W, itemsize):
    """Approx VMEM footprint of the pipeline (2x in + 2x out + 2x params),
    accounting for (sublane=8, lane=128) tile padding."""
    lanes = _round_up(min(cb, C), 128)
    in_b = (H + 2) * _round_up(W + 2, 8) * lanes * itemsize
    out_b = H * _round_up(W, 8) * lanes * itemsize
    w_b = _round_up(9, 8) * lanes * itemsize
    bia_b = _round_up(1, 8) * lanes * 4
    return 2 * (in_b + out_b) + 2 * (w_b + bia_b)


def _pick_channel_block(N, C, H, W, itemsize,
                        budget_bytes=40 * 1024 * 1024, min_steps=8):
    """Channel-block size: multiple of 128 (lane constraint) or full C."""
    if C <= 128:
        # Full channel extent (lane dim must be a multiple of 128 or the full dim).
        # TODO(synk): add an H-row-tiling path for very large single planes that
        # exceed the padded VMEM budget even at the minimum channel block.
        return C

    def steps(cb):
        return N * ((C + cb - 1) // cb)

    cands = [cb for cb in range(128, C + 1, 128)
             if _padded_pipeline_bytes(cb, C, H, W, itemsize) <= budget_bytes]
    if not cands:
        # TODO(synk): H-row tiling for very large planes; fall back to the minimum
        # legal lane block and let vmem_limit_bytes absorb it.
        return 128
    divs = [cb for cb in cands if C % cb == 0]
    pool = divs if divs else cands
    enough = [cb for cb in pool if steps(cb) >= min_steps]
    # Biggest block that still leaves >= min_steps grid steps (v7x 2-TC sharding,
    # pipeline depth); otherwise maximize the number of steps.
    return max(enough) if enough else min(pool)


def dwconv_pallas(x_nchw, weight, bias):
    """Depthwise 3x3 conv, stride 1, padding 1 (PyTorch DWConv forward).

    x_nchw : (N, C, H, W)
    weight : (C, 1, 3, 3)  PyTorch depthwise layout
    bias   : (C,)
    returns (N, C, H, W)  in x's dtype
    """
    N, C, H, W = x_nchw.shape
    dtype = x_nchw.dtype
    itemsize = jnp.dtype(dtype).itemsize

    # One-time layout pass (fused by XLA): NCHW -> NHWC with a 1-pixel zero halo.
    x_nhwc = jnp.transpose(x_nchw, (0, 2, 3, 1))
    x_pad = jnp.pad(x_nhwc, ((0, 0), (1, 1), (1, 1), (0, 0)))

    # (C, 1, 3, 3) -> (9, C), row index = kh*3 + kw; multiply in the input dtype.
    w2d = jnp.transpose(weight.reshape(C, 9), (1, 0)).astype(dtype)
    b2d = bias.reshape(1, C).astype(jnp.float32)

    Cb = _pick_channel_block(N, C, H, W, itemsize)
    n_cb = pl.cdiv(C, Cb)

    need = _padded_pipeline_bytes(Cb, C, H, W, itemsize)
    vmem_limit = int(min(max(need * 5 // 4 + (1 << 20), 16 << 20), 48 << 20))

    out_nhwc = pl.pallas_call(
        _dwconv_kernel,
        out_shape=jax.ShapeDtypeStruct((N, H, W, C), dtype),
        grid_spec=pltpu.PrefetchScalarGridSpec(
            num_scalar_prefetch=0,
            grid=(N, n_cb),
            in_specs=[
                pl.BlockSpec((1, H + 2, W + 2, Cb), lambda n, ci: (n, 0, 0, ci)),
                pl.BlockSpec((9, Cb), lambda n, ci: (0, ci)),
                pl.BlockSpec((1, Cb), lambda n, ci: (0, ci)),
            ],
            out_specs=pl.BlockSpec((1, H, W, Cb), lambda n, ci: (n, 0, 0, ci)),
        ),
        compiler_params=pltpu.CompilerParams(
            dimension_semantics=("parallel", "parallel"),
            vmem_limit_bytes=vmem_limit,
        ),
    )(x_pad, w2d, b2d)

    return jnp.transpose(out_nhwc, (0, 3, 1, 2))


def _reference(x_nchw, weight, bias):
    C = x_nchw.shape[1]
    out = lax.conv_general_dilated(
        x_nchw.astype(jnp.float32),
        weight.astype(jnp.float32),
        window_strides=(1, 1),
        padding=((1, 1), (1, 1)),
        dimension_numbers=("NCHW", "OIHW", "NCHW"),
        feature_group_count=C,
    )
    return out + bias.reshape(1, C, 1, 1).astype(jnp.float32)


if __name__ == "__main__":
    key = jax.random.PRNGKey(0)
    kx, kw, kb = jax.random.split(key, 3)

    N, C, H, W = 2, 4, 16, 16
    x = jax.random.normal(kx, (N, C, H, W), dtype=jnp.float32)
    weight = jax.random.normal(kw, (C, 1, 3, 3), dtype=jnp.float32) * 0.1
    bias = jax.random.normal(kb, (C,), dtype=jnp.float32) * 0.1

    fn = jax.jit(dwconv_pallas)
    out = jax.block_until_ready(fn(x, weight, bias))

    ref = _reference(x, weight, bias)
    assert out.shape == (N, C, H, W)
    assert bool(jnp.allclose(out.astype(jnp.float32), ref, atol=1e-4, rtol=1e-4)), \
        "mismatch vs reference"

    print("KERNEL_OK")
</pallas_src>

<mosaic_0001>
module attributes {stable_mosaic.version = 11 : i64} {
  func.func @_dwconv_kernel(%arg0: i32, %arg1: i32, %arg2: memref<1x18x18x4xf32, #tpu.memory_space<vmem>>, %arg3: memref<9x4xf32, #tpu.memory_space<vmem>>, %arg4: memref<1x4xf32, #tpu.memory_space<vmem>>, %arg5: memref<1x16x16x4xf32, #tpu.memory_space<vmem>>) attributes {dimension_semantics = [#tpu.dimension_semantics<parallel>, #tpu.dimension_semantics<parallel>], iteration_bounds = array<i64: 2, 1>, scalar_prefetch = 0 : i64, scratch_operands = 0 : i64, tpu.core_type = #tpu.core_type<tc>, window_params = [{transform_indices = @transform_0, window_bounds = array<i64: 1, 18, 18, 4>}, {transform_indices = @transform_1, window_bounds = array<i64: 9, 4>}, {transform_indices = @transform_2, window_bounds = array<i64: 1, 4>}, {transform_indices = @transform_3, window_bounds = array<i64: 1, 16, 16, 4>}]} {
    %c0 = arith.constant 0 : index
    %c0_0 = arith.constant 0 : index
    %c0_1 = arith.constant 0 : index
    %c0_2 = arith.constant 0 : index
    %0 = vector.load %arg2[%c0, %c0_0, %c0_1, %c0_2] : memref<1x18x18x4xf32, #tpu.memory_space<vmem>>, vector<1x16x16x4xf32>
    %1 = vector.shape_cast %0 : vector<1x16x16x4xf32> to vector<16x16x4xf32>
    %c0_3 = arith.constant 0 : index
    %c0_4 = arith.constant 0 : index
    %2 = vector.load %arg3[%c0_3, %c0_4] : memref<9x4xf32, #tpu.memory_space<vmem>>, vector<1x4xf32>
    %3 = vector.shape_cast %2 : vector<1x4xf32> to vector<4xf32>
    %4 = vector.shape_cast %3 : vector<4xf32> to vector<1x1x4xf32>
    %5 = vector.broadcast %4 : vector<1x1x4xf32> to vector<16x16x4xf32>
    %6 = arith.mulf %1, %5 : vector<16x16x4xf32>
    %c0_5 = arith.constant 0 : index
    %c0_6 = arith.constant 0 : index
    %c1 = arith.constant 1 : index
    %c0_7 = arith.constant 0 : index
    %7 = vector.load %arg2[%c0_5, %c0_6, %c1, %c0_7] : memref<1x18x18x4xf32, #tpu.memory_space<vmem>>, vector<1x16x16x4xf32>
    %8 = vector.shape_cast %7 : vector<1x16x16x4xf32> to vector<16x16x4xf32>
    %c1_8 = arith.constant 1 : index
    %c0_9 = arith.constant 0 : index
    %9 = vector.load %arg3[%c1_8, %c0_9] : memref<9x4xf32, #tpu.memory_space<vmem>>, vector<1x4xf32>
    %10 = vector.shape_cast %9 : vector<1x4xf32> to vector<4xf32>
    %11 = vector.shape_cast %10 : vector<4xf32> to vector<1x1x4xf32>
    %12 = vector.broadcast %11 : vector<1x1x4xf32> to vector<16x16x4xf32>
    %13 = arith.mulf %8, %12 : vector<16x16x4xf32>
    %14 = arith.addf %6, %13 : vector<16x16x4xf32>
    %c0_10 = arith.constant 0 : index
    %c0_11 = arith.constant 0 : index
    %c2 = arith.constant 2 : index
    %c0_12 = arith.constant 0 : index
    %15 = vector.load %arg2[%c0_10, %c0_11, %c2, %c0_12] : memref<1x18x18x4xf32, #tpu.memory_space<vmem>>, vector<1x16x16x4xf32>
    %16 = vector.shape_cast %15 : vector<1x16x16x4xf32> to vector<16x16x4xf32>
    %c2_13 = arith.constant 2 : index
    %c0_14 = arith.constant 0 : index
    %17 = vector.load %arg3[%c2_13, %c0_14] : memref<9x4xf32, #tpu.memory_space<vmem>>, vector<1x4xf32>
    %18 = vector.shape_cast %17 : vector<1x4xf32> to vector<4xf32>
    %19 = vector.shape_cast %18 : vector<4xf32> to vector<1x1x4xf32>
    %20 = vector.broadcast %19 : vector<1x1x4xf32> to vector<16x16x4xf32>
    %21 = arith.mulf %16, %20 : vector<16x16x4xf32>
    %22 = arith.addf %14, %21 : vector<16x16x4xf32>
    %c0_15 = arith.constant 0 : index
    %c1_16 = arith.constant 1 : index
    %c0_17 = arith.constant 0 : index
    %c0_18 = arith.constant 0 : index
    %23 = vector.load %arg2[%c0_15, %c1_16, %c0_17, %c0_18] : memref<1x18x18x4xf32, #tpu.memory_space<vmem>>, vector<1x16x16x4xf32>
    %24 = vector.shape_cast %23 : vector<1x16x16x4xf32> to vector<16x16x4xf32>
    %c3 = arith.constant 3 : index
    %c0_19 = arith.constant 0 : index
    %25 = vector.load %arg3[%c3, %c0_19] : memref<9x4xf32, #tpu.memory_space<vmem>>, vector<1x4xf32>
    %26 = vector.shape_cast %25 : vector<1x4xf32> to vector<4xf32>
    %27 = vector.shape_cast %26 : vector<4xf32> to vector<1x1x4xf32>
    %28 = vector.broadcast %27 : vector<1x1x4xf32> to vector<16x16x4xf32>
    %29 = arith.mulf %24, %28 : vector<16x16x4xf32>
    %30 = arith.addf %22, %29 : vector<16x16x4xf32>
    %c0_20 = arith.constant 0 : index
    %c1_21 = arith.constant 1 : index
    %c1_22 = arith.constant 1 : index
    %c0_23 = arith.constant 0 : index
    %31 = vector.load %arg2[%c0_20, %c1_21, %c1_22, %c0_23] : memref<1x18x18x4xf32, #tpu.memory_space<vmem>>, vector<1x16x16x4xf32>
    %32 = vector.shape_cast %31 : vector<1x16x16x4xf32> to vector<16x16x4xf32>
    %c4 = arith.constant 4 : index
    %c0_24 = arith.constant 0 : index
    %33 = vector.load %arg3[%c4, %c0_24] : memref<9x4xf32, #tpu.memory_space<vmem>>, vector<1x4xf32>
    %34 = vector.shape_cast %33 : vector<1x4xf32> to vector<4xf32>
    %35 = vector.shape_cast %34 : vector<4xf32> to vector<1x1x4xf32>
    %36 = vector.broadcast %35 : vector<1x1x4xf32> to vector<16x16x4xf32>
    %37 = arith.mulf %32, %36 : vector<16x16x4xf32>
    %38 = arith.addf %30, %37 : vector<16x16x4xf32>
    %c0_25 = arith.constant 0 : index
    %c1_26 = arith.constant 1 : index
    %c2_27 = arith.constant 2 : index
    %c0_28 = arith.constant 0 : index
    %39 = vector.load %arg2[%c0_25, %c1_26, %c2_27, %c0_28] : memref<1x18x18x4xf32, #tpu.memory_space<vmem>>, vector<1x16x16x4xf32>
    %40 = vector.shape_cast %39 : vector<1x16x16x4xf32> to vector<16x16x4xf32>
    %c5 = arith.constant 5 : index
    %c0_29 = arith.constant 0 : index
    %41 = vector.load %arg3[%c5, %c0_29] : memref<9x4xf32, #tpu.memory_space<vmem>>, vector<1x4xf32>
    %42 = vector.shape_cast %41 : vector<1x4xf32> to vector<4xf32>
    %43 = vector.shape_cast %42 : vector<4xf32> to vector<1x1x4xf32>
    %44 = vector.broadcast %43 : vector<1x1x4xf32> to vector<16x16x4xf32>
    %45 = arith.mulf %40, %44 : vector<16x16x4xf32>
    %46 = arith.addf %38, %45 : vector<16x16x4xf32>
    %c0_30 = arith.constant 0 : index
    %c2_31 = arith.constant 2 : index
    %c0_32 = arith.constant 0 : index
    %c0_33 = arith.constant 0 : index
    %47 = vector.load %arg2[%c0_30, %c2_31, %c0_32, %c0_33] : memref<1x18x18x4xf32, #tpu.memory_space<vmem>>, vector<1x16x16x4xf32>
    %48 = vector.shape_cast %47 : vector<1x16x16x4xf32> to vector<16x16x4xf32>
    %c6 = arith.constant 6 : index
    %c0_34 = arith.constant 0 : index
    %49 = vector.load %arg3[%c6, %c0_34] : memref<9x4xf32, #tpu.memory_space<vmem>>, vector<1x4xf32>
    %50 = vector.shape_cast %49 : vector<1x4xf32> to vector<4xf32>
    %51 = vector.shape_cast %50 : vector<4xf32> to vector<1x1x4xf32>
    %52 = vector.broadcast %51 : vector<1x1x4xf32> to vector<16x16x4xf32>
    %53 = arith.mulf %48, %52 : vector<16x16x4xf32>
    %54 = arith.addf %46, %53 : vector<16x16x4xf32>
    %c0_35 = arith.constant 0 : index
    %c2_36 = arith.constant 2 : index
    %c1_37 = arith.constant 1 : index
    %c0_38 = arith.constant 0 : index
    %55 = vector.load %arg2[%c0_35, %c2_36, %c1_37, %c0_38] : memref<1x18x18x4xf32, #tpu.memory_space<vmem>>, vector<1x16x16x4xf32>
    %56 = vector.shape_cast %55 : vector<1x16x16x4xf32> to vector<16x16x4xf32>
    %c7 = arith.constant 7 : index
    %c0_39 = arith.constant 0 : index
    %57 = vector.load %arg3[%c7, %c0_39] : memref<9x4xf32, #tpu.memory_space<vmem>>, vector<1x4xf32>
    %58 = vector.shape_cast %57 : vector<1x4xf32> to vector<4xf32>
    %59 = vector.shape_cast %58 : vector<4xf32> to vector<1x1x4xf32>
    %60 = vector.broadcast %59 : vector<1x1x4xf32> to vector<16x16x4xf32>
    %61 = arith.mulf %56, %60 : vector<16x16x4xf32>
    %62 = arith.addf %54, %61 : vector<16x16x4xf32>
    %c0_40 = arith.constant 0 : index
    %c2_41 = arith.constant 2 : index
    %c2_42 = arith.constant 2 : index
    %c0_43 = arith.constant 0 : index
    %63 = vector.load %arg2[%c0_40, %c2_41, %c2_42, %c0_43] : memref<1x18x18x4xf32, #tpu.memory_space<vmem>>, vector<1x16x16x4xf32>
    %64 = vector.shape_cast %63 : vector<1x16x16x4xf32> to vector<16x16x4xf32>
    %c8 = arith.constant 8 : index
    %c0_44 = arith.constant 0 : index
    %65 = vector.load %arg3[%c8, %c0_44] : memref<9x4xf32, #tpu.memory_space<vmem>>, vector<1x4xf32>
    %66 = vector.shape_cast %65 : vector<1x4xf32> to vector<4xf32>
    %67 = vector.shape_cast %66 : vector<4xf32> to vector<1x1x4xf32>
    %68 = vector.broadcast %67 : vector<1x1x4xf32> to vector<16x16x4xf32>
    %69 = arith.mulf %64, %68 : vector<16x16x4xf32>
    %70 = arith.addf %62, %69 : vector<16x16x4xf32>
    %c0_45 = arith.constant 0 : index
    %c0_46 = arith.constant 0 : index
    %71 = vector.load %arg4[%c0_45, %c0_46] : memref<1x4xf32, #tpu.memory_space<vmem>>, vector<1x4xf32>
    %72 = vector.shape_cast %71 : vector<1x4xf32> to vector<4xf32>
    %73 = vector.shape_cast %72 : vector<4xf32> to vector<1x1x4xf32>
    %74 = vector.broadcast %73 : vector<1x1x4xf32> to vector<16x16x4xf32>
    %75 = arith.addf %70, %74 : vector<16x16x4xf32>
    %c0_47 = arith.constant 0 : index
    %c0_48 = arith.constant 0 : index
    %c0_49 = arith.constant 0 : index
    %c0_50 = arith.constant 0 : index
    %76 = vector.load %arg5[%c0_47, %c0_48, %c0_49, %c0_50] : memref<1x16x16x4xf32, #tpu.memory_space<vmem>>, vector<1x16x16x4xf32>
    %77 = vector.shape_cast %76 : vector<1x16x16x4xf32> to vector<16x16x4xf32>
    %78 = vector.shape_cast %75 : vector<16x16x4xf32> to vector<1x16x16x4xf32>
    tpu.vector_store %arg5[%c0_47, %c0_48, %c0_49, %c0_50], %78 {strides = array<i32>} : memref<1x16x16x4xf32, #tpu.memory_space<vmem>>, vector<1x16x16x4xf32>,
    return
  }
  func.func @transform_0(%arg0: i32, %arg1: i32) -> (i32, i32, i32, i32) {
    %c0_i32 = arith.constant 0 : i32
    %c0_i32_0 = arith.constant 0 : i32
    %c0_i32_1 = arith.constant 0 : i32
    return %arg0, %c0_i32, %c0_i32_0, %arg1 : i32, i32, i32, i32
  }
  func.func @transform_1(%arg0: i32, %arg1: i32) -> (i32, i32) {
    %c0_i32 = arith.constant 0 : i32
    %c0_i32_0 = arith.constant 0 : i32
    return %c0_i32, %arg1 : i32, i32
  }
  func.func @transform_2(%arg0: i32, %arg1: i32) -> (i32, i32) {
    %c0_i32 = arith.constant 0 : i32
    %c0_i32_0 = arith.constant 0 : i32
    return %c0_i32, %arg1 : i32, i32
  }
  func.func @transform_3(%arg0: i32, %arg1: i32) -> (i32, i32, i32, i32) {
    %c0_i32 = arith.constant 0 : i32
    %c0_i32_0 = arith.constant 0 : i32
    %c0_i32_1 = arith.constant 0 : i32
    return %arg0, %c0_i32, %c0_i32_0, %arg1 : i32, i32, i32, i32
  }
}

</mosaic_0001>

<bundles_post_ra>
// kernel: dwconv_pallas.1
= control target key start
LH: loop header
LB: loop body
LE: loop exit
PB: predicated region body
PF: predicated region fallthrough
CT: control target
= control target key end

     0   :  { %s1589_s12 = smov 0   ;;  %s1591_s13 = smov 0   ;;  %s2262_s0 = inlined_call_operand.vmem [shape: f32[2,18,18,4], index: 0, kind: input, shape index: {}]   ;;  %s2263_s1 = inlined_call_operand.vmem [shape: f32[9,4], index: 1, kind: input, shape index: {}]   ;;  %s2264_s2 = inlined_call_operand.vmem [shape: f32[1,4], index: 2, kind: input, shape index: {}]   ;;  %s2265_s3 = inlined_call_operand.vmem [shape: f32[2,16,16,4], index: 3, kind: output, shape index: {}]  }
   0x1   :  { %s1593_s14 = smov 0  }
   0x2 LB: > { %s25_s15 = sadd.s32 1, %s1563_s13  ;;  %p1301_p0 = scmp.ge.s32.totalorder %s1567_s14, 1  ;;  %s1567_s14 = sphi %s1593_s14, %s13_s14   ;;  %s1563_s13 = sphi %s1591_s13, %s2267_s13   ;;  %s1559_s12 = sphi %s1589_s12, %s2266_s12  }
   0x3   : > { %p27_p1 = scmp.ge.s32.totalorder %s25_s15, 2  ;;  %p173_p2 = scmp.lt.s32.totalorder %s1567_s14, 3 }
   0x5   : > { %s2269_s15 = smov (%p27_p1, %s25_s15), 0  ;;  %p174_p3 = pnand %p1301_p0, %p173_p2 }
   0x6   : > { %p210_p4 = scmp.lt.s32.totalorder (!%p174_p3), %s1559_s12, 1  ;;  %v1613_v0 = vld [vmem:[%s2263_s1] ss:$0 sm:$0xff] (!%p174_p3)  ;;  %v1618_v1 = vld [vmem:[%s2263_s1 + $0x1] ss:$0 sm:$0xff] (!%p174_p3)  ;;  %vm1151_vm0 = vcmask (!%p174_p3), 31744  }
   0x7   : > { %177 = sbr.rel (%p174_p3) target bundleno = 174 (0xae), region = 32  ;;  %v1623_v2 = vld [vmem:[%s2263_s1 + $0x2] ss:$0 sm:$0xff] (!%p174_p3)  ;;  %v1633_v3 = vld [vmem:[%s2263_s1 + $0x3] ss:$0 sm:$0xff] (!%p174_p3) }
   0x8   : > { %v1638_v4 = vld [vmem:[%s2263_s1 + $0x4] ss:$0 sm:$0xff] (!%p174_p3)  ;;  %v1643_v5 = vld [vmem:[%s2263_s1 + $0x5] ss:$0 sm:$0xff] (!%p174_p3)  ;;  %v1656_v14 = vld [vmem:[%s2263_s1 + $0x6] ss:$0 sm:$0xff] (!%p174_p3) }
   0x9   : > { %v1663_v17 = vld [vmem:[%s2263_s1 + $0x7] ss:$0 sm:$0xff] (!%p174_p3)  ;;  %v1668_v18 = vld [vmem:[%s2263_s1 + $0x8] ss:$0 sm:$0xff] (!%p174_p3) }
   0xe   : > { %s2271_s12 = smov (!%p210_p4, %s1559_s12), 1 }
   0xf   : > { %s1510_s16 = smul.u32 432, %s2271_s12  ;;  %s1509_s11 = sshll.u32 %s2271_s12, 8 }
  0x10   : > { %s1758_s19 = scalar_lea.vmem %s2265_s3, %s1509_s11 }
  0x11   : > { %s1628_s25 = scalar_lea.vmem %s2262_s0, %s1510_s16 }
  0x12   : > { %v233_v6 = vld [vmem:[%s1628_s25] sm:$0xff]  ;;  %v1308_v12 = vld [vmem:[%s1628_s25 + $0x18] sm:$0xff]  ;;  %v234_v22 = vld [vmem:[%s1628_s25 + $0x8] sm:$0xff] }
  0x13   : > { %v302_v7 = vld [vmem:[%s1628_s25 + $0x1] sm:$0xff]  ;;  %v270_v9 = vmul.f32 %v1613_v0, %v233_v6  ;;  %v1341_v13 = vld [vmem:[%s1628_s25 + $0x19] sm:$0xff]  ;;  %v542_v15 = vmul.f32 %v1633_v3, %v1308_v12  ;;  %v303_v23 = vld [vmem:[%s1628_s25 + $0x9] sm:$0xff]  ;;  %v272_v25 = vmul.f32 %v1308_v12, %v1613_v0  ;;  %v271_v29 = vmul.f32 %v1613_v0, %v234_v22 }
  0x14   : > { %v403_v8 = vld [vmem:[%s1628_s25 + $0x2] sm:$0xff]  ;;  %v339_v10 = vmul.f32 %v1618_v1, %v302_v7  ;;  %v1374_v16 = vld [vmem:[%s1628_s25 + $0x1a] sm:$0xff]  ;;  %v643_v20 = vmul.f32 %v1638_v4, %v1341_v13  ;;  %v404_v24 = vld [vmem:[%s1628_s25 + $0xa] sm:$0xff]  ;;  %v340_v30 = vmul.f32 %v1618_v1, %v303_v23  ;;  %v341_v32 = vmul.f32 %v1341_v13, %v1618_v1 }
  0x15   : > { %v440_v11 = vmul.f32 %v1623_v2, %v403_v8  ;;  %v744_v21 = vmul.f32 %v1643_v5, %v1374_v16  ;;  %v1407_v26 = vld [vmem:[%s1628_s25 + $0x30] sm:$0xff]  ;;  %v441_v31 = vmul.f32 %v1623_v2, %v404_v24  ;;  %v1309_v37 = vld [vmem:[%s1628_s25 + $0x20] sm:$0xff]  ;;  %v1693_v45 = vld [vmem:[%s1628_s25 + $0x38] sm:$0xff]  ;;  %v442_v49 = vmul.f32 %v1374_v16, %v1623_v2 }
  0x16   : > { %v371_v19 = vadd.f32 %v339_v10, %v270_v9  ;;  %v1440_v27 = vld [vmem:[%s1628_s25 + $0x31] sm:$0xff]  ;;  %v846_v34 = vmul.f32 %v1656_v14, %v1407_v26  ;;  %v1342_v38 = vld [vmem:[%s1628_s25 + $0x21] sm:$0xff]  ;;  %v372_v40 = vadd.f32 %v340_v30, %v271_v29  ;;  %v543_v41 = vmul.f32 %v1633_v3, %v1309_v37  ;;  %v1696_v46 = vld [vmem:[%s1628_s25 + $0x39] sm:$0xff] }
  0x17   : > { %v1473_v28 = vld [vmem:[%s1628_s25 + $0x32] sm:$0xff]  ;;  %v947_v35 = vmul.f32 %v1663_v17, %v1440_v27  ;;  %v1375_v39 = vld [vmem:[%s1628_s25 + $0x22] sm:$0xff]  ;;  %v644_v42 = vmul.f32 %v1638_v4, %v1342_v38  ;;  %v1699_v47 = vld [vmem:[%s1628_s25 + $0x3a] sm:$0xff]  ;;  %v373_v48 = vadd.f32 %v341_v32, %v272_v25  ;;  %v544_v50 = vmul.f32 %v1407_v26, %v1633_v3 }
  0x18   : > { %v472_v33 = vadd.f32 %v440_v11, %v371_v19  ;;  %v1048_v36 = vmul.f32 %v1668_v18, %v1473_v28  ;;  %v745_v43 = vmul.f32 %v1643_v5, %v1375_v39  ;;  %v473_v51 = vadd.f32 %v441_v31, %v372_v40  ;;  %v1712_v60 = vld [vmem:[%s1628_s25 + $0x48] sm:$0xff]  ;;  %v1736_v25 = vld [vmem:[%s1628_s25 + $0x50] sm:$0xff] }
  0x19   : > { %v847_v52 = vmul.f32 %v1656_v14, %v1693_v45  ;;  %v948_v53 = vmul.f32 %v1663_v17, %v1696_v46  ;;  %v1049_v54 = vmul.f32 %v1668_v18, %v1699_v47  ;;  %v474_v56 = vadd.f32 %v442_v49, %v373_v48  ;;  %v1715_v61 = vld [vmem:[%s1628_s25 + $0x49] sm:$0xff]  ;;  %v1443_v40 = vld [vmem:[%s1628_s25 + $0x51] sm:$0xff] }
  0x1a   : > { %v574_v44 = vadd.f32 %v542_v15, %v472_v33  ;;  %v645_v57 = vmul.f32 %v1440_v27, %v1638_v4  ;;  %v746_v58 = vmul.f32 %v1473_v28, %v1643_v5  ;;  %v575_v59 = vadd.f32 %v543_v41, %v473_v51  ;;  %v1725_v11 = vld [vmem:[%s1628_s25 + $0x4a] sm:$0xff]  ;;  %v1476_v41 = vld [vmem:[%s1628_s25 + $0x52] sm:$0xff] }
  0x1b   : > { %v273_v62 = vmul.f32 %v1309_v37, %v1613_v0  ;;  %v342_v63 = vmul.f32 %v1342_v38, %v1618_v1  ;;  %v443_v6 = vmul.f32 %v1375_v39, %v1623_v2  ;;  %v576_v8 = vadd.f32 %v544_v50, %v474_v56  ;;  %v1747_v37 = vld [vmem:[%s2264_s2] ss:$0 sm:$0xff] }
  0x1c   : > { %v675_v55 = vadd.f32 %v643_v20, %v574_v44  ;;  %v848_v9 = vmul.f32 %v1656_v14, %v1712_v60  ;;  %v949_v10 = vmul.f32 %v1663_v17, %v1715_v61  ;;  %v676_v12 = vadd.f32 %v644_v42, %v575_v59 }
  0x1d   : > { %v1050_v13 = vmul.f32 %v1668_v18, %v1725_v11  ;;  %v374_v15 = vadd.f32 %v342_v63, %v273_v62  ;;  %v545_v16 = vmul.f32 %v1693_v45, %v1633_v3  ;;  %v677_v20 = vadd.f32 %v645_v57, %v576_v8 }
  0x1e   : > { %v776_v7 = vadd.f32 %v744_v21, %v675_v55  ;;  %v646_v21 = vmul.f32 %v1696_v46, %v1638_v4  ;;  %v747_v22 = vmul.f32 %v1699_v47, %v1643_v5  ;;  %v777_v23 = vadd.f32 %v745_v43, %v676_v12 }
  0x1f   : > { %v475_v24 = vadd.f32 %v443_v6, %v374_v15  ;;  %v274_v29 = vmul.f32 %v1407_v26, %v1613_v0  ;;  %v343_v30 = vmul.f32 %v1440_v27, %v1618_v1  ;;  %v778_v32 = vadd.f32 %v746_v58, %v677_v20 }
  0x20   : > { %v878_v19 = vadd.f32 %v846_v34, %v776_v7  ;;  %v849_v33 = vmul.f32 %v1656_v14, %v1736_v25  ;;  %v444_v34 = vmul.f32 %v1473_v28, %v1623_v2  ;;  %v879_v38 = vadd.f32 %v847_v52, %v777_v23 }
  0x21   : > { %v577_v39 = vadd.f32 %v545_v16, %v475_v24  ;;  %v375_v26 = vadd.f32 %v343_v30, %v274_v29  ;;  %v546_v27 = vmul.f32 %v1712_v60, %v1633_v3  ;;  %v880_v42 = vadd.f32 %v848_v9, %v778_v32  ;;  %v1444_v9 = vld [vmem:[%s1628_s25 + $0x61] sm:$0xff] }
  0x22   : > { %v979_v31 = vadd.f32 %v947_v35, %v878_v19  ;;  %v950_v43 = vmul.f32 %v1663_v17, %v1443_v40  ;;  %v1051_v28 = vmul.f32 %v1668_v18, %v1476_v41  ;;  %v980_v44 = vadd.f32 %v948_v53, %v879_v38  ;;  %v1411_v53 = vld [vmem:[%s1628_s25 + $0x60] sm:$0xff]  ;;  %v1412_v32 = vld [vmem:[%s1628_s25 + $0x68] sm:$0xff] }
  0x23   : > { %v678_v48 = vadd.f32 %v646_v21, %v577_v39  ;;  %v476_v49 = vadd.f32 %v444_v34, %v375_v26  ;;  %v647_v50 = vmul.f32 %v1715_v61, %v1638_v4  ;;  %v981_v51 = vadd.f32 %v949_v10, %v880_v42  ;;  %v1477_v16 = vld [vmem:[%s1628_s25 + $0x62] sm:$0xff] }
  0x24   : > { %v1080_v35 = vadd.f32 %v1048_v36, %v979_v31  ;;  %v748_v52 = vmul.f32 %v1725_v11, %v1643_v5  ;;  %v275_v55 = vmul.f32 %v1693_v45, %v1613_v0  ;;  %v1081_v56 = vadd.f32 %v1049_v54, %v980_v44 }
  0x25   : > { %v779_v57 = vadd.f32 %v747_v22, %v678_v48  ;;  %v578_v58 = vadd.f32 %v546_v27, %v476_v49  ;;  %v344_v59 = vmul.f32 %v1696_v46, %v1618_v1  ;;  %v1082_v62 = vadd.f32 %v1050_v13, %v981_v51  ;;  %v1478_v27 = vld [vmem:[%s1628_s25 + $0x6a] sm:$0xff] }
  0x26   : > { %v1119_v36 = vadd.f32 %v1747_v37, %v1080_v35  ;;  %v850_v63 = vmul.f32 %v1656_v14, %v1411_v53  ;;  %v445_v6 = vmul.f32 %v1699_v47, %v1623_v2  ;;  %v547_v45 = vmul.f32 %v1736_v25, %v1633_v3 }
  0x27   : > { %v1120_v54 = vadd.f32 %v1747_v37, %v1081_v56  ;;  %v881_v7 = vadd.f32 %v849_v33, %v779_v57  ;;  %v679_v8 = vadd.f32 %v647_v50, %v578_v58  ;;  %v376_v10 = vadd.f32 %v344_v59, %v275_v55  ;;  %v1446_v59 = vld [vmem:[%s1628_s25 + $0x79] sm:$0xff] }
  0x28   : > { %1152 = vst.msk [vmem:[%s1758_s19] sm:$0xff] %vm1151_vm0, %v1119_v36  ;;  %v1121_v46 = vadd.f32 %v1747_v37, %v1082_v62  ;;  %v951_v12 = vmul.f32 %v1663_v17, %v1444_v9  ;;  %v648_v19 = vmul.f32 %v1443_v40, %v1638_v4  ;;  %v1052_v20 = vmul.f32 %v1668_v18, %v1477_v16 }
  0x29   : > { %1153 = vst.msk [vmem:[%s1758_s19 + $0x8] sm:$0xff] %vm1151_vm0, %v1120_v54  ;;  %v982_v13 = vadd.f32 %v950_v43, %v881_v7  ;;  %v780_v15 = vadd.f32 %v748_v52, %v679_v8  ;;  %v477_v47 = vadd.f32 %v445_v6, %v376_v10  ;;  %v276_v21 = vmul.f32 %v1712_v60, %v1613_v0  ;;  %v1413_v52 = vld [vmem:[%s1628_s25 + $0x78] sm:$0xff] }
  0x2a   : > { %1154 = vst.msk [vmem:[%s1758_s19 + $0x10] sm:$0xff] %vm1151_vm0, %v1121_v46  ;;  %v345_v22 = vmul.f32 %v1715_v61, %v1618_v1  ;;  %v446_v23 = vmul.f32 %v1725_v11, %v1623_v2  ;;  %v749_v31 = vmul.f32 %v1476_v41, %v1643_v5  ;;  %v851_v33 = vmul.f32 %v1656_v14, %v1412_v32  ;;  %v1445_v11 = vld [vmem:[%s1628_s25 + $0x69] sm:$0xff]  ;;  %v1479_v46 = vld [vmem:[%s1628_s25 + $0x7a] sm:$0xff] }
  0x2b   : > { %v1083_v24 = vadd.f32 %v1051_v28, %v982_v13  ;;  %v882_v29 = vadd.f32 %v850_v63, %v780_v15  ;;  %v579_v30 = vadd.f32 %v547_v45, %v477_v47  ;;  %v548_v38 = vmul.f32 %v1411_v53, %v1633_v3  ;;  %v1414_v13 = vld [vmem:[%s1628_s25 + $0x80] sm:$0xff] }
  0x2c   : > { %v377_v34 = vadd.f32 %v345_v22, %v276_v21  ;;  %v649_v26 = vmul.f32 %v1444_v9, %v1638_v4  ;;  %v277_v42 = vmul.f32 %v1736_v25, %v1613_v0  ;;  %v346_v43 = vmul.f32 %v1443_v40, %v1618_v1 }
  0x2d   : > { %v1122_v60 = vadd.f32 %v1747_v37, %v1083_v24  ;;  %v983_v39 = vadd.f32 %v951_v12, %v882_v29  ;;  %v680_v61 = vadd.f32 %v648_v19, %v579_v30  ;;  %v447_v28 = vmul.f32 %v1476_v41, %v1623_v2 }
  0x2e   : > { %v478_v35 = vadd.f32 %v446_v23, %v377_v34  ;;  %v952_v49 = vmul.f32 %v1663_v17, %v1445_v11  ;;  %v1053_v50 = vmul.f32 %v1668_v18, %v1478_v27  ;;  %v750_v51 = vmul.f32 %v1477_v16, %v1643_v5 }
  0x2f   : > { %1155 = vst.msk [vmem:[%s1758_s19 + $0x18] sm:$0xff] %vm1151_vm0, %v1122_v60  ;;  %v1084_v44 = vadd.f32 %v1052_v20, %v983_v39  ;;  %v781_v48 = vadd.f32 %v749_v31, %v680_v61  ;;  %v378_v55 = vadd.f32 %v346_v43, %v277_v42  ;;  %v549_v25 = vmul.f32 %v1412_v32, %v1633_v3  ;;  %v1480_v60 = vld [vmem:[%s1628_s25 + $0x82] sm:$0xff] }
  0x30   : > { %v580_v36 = vadd.f32 %v548_v38, %v478_v35  ;;  %v852_v56 = vmul.f32 %v1656_v14, %v1413_v52  ;;  %v650_v57 = vmul.f32 %v1445_v11, %v1638_v4  ;;  %v278_v63 = vmul.f32 %v1411_v53, %v1613_v0 }
  0x31   : > { %v1123_v40 = vadd.f32 %v1747_v37, %v1084_v44  ;;  %v883_v41 = vadd.f32 %v851_v33, %v781_v48  ;;  %v479_v62 = vadd.f32 %v447_v28, %v378_v55  ;;  %v347_v6 = vmul.f32 %v1444_v9, %v1618_v1  ;;  %v1448_v48 = vld [vmem:[%s1628_s25 + $0x91] sm:$0xff] }
  0x32   : > { %v681_v58 = vadd.f32 %v649_v26, %v580_v36  ;;  %v953_v54 = vmul.f32 %v1663_v17, %v1446_v59  ;;  %v751_v7 = vmul.f32 %v1478_v27, %v1643_v5  ;;  %v448_v8 = vmul.f32 %v1477_v16, %v1623_v2  ;;  %v1447_v16 = vld [vmem:[%s1628_s25 + $0x81] sm:$0xff]  ;;  %v1415_v26 = vld [vmem:[%s1628_s25 + $0x90] sm:$0xff] }
  0x33   : > { %1156 = vst.msk [vmem:[%s1758_s19 + $0x20] sm:$0xff] %vm1151_vm0, %v1123_v40  ;;  %v984_v45 = vadd.f32 %v952_v49, %v883_v41  ;;  %v581_v12 = vadd.f32 %v549_v25, %v479_v62  ;;  %v379_v15 = vadd.f32 %v347_v6, %v278_v63  ;;  %v550_v47 = vmul.f32 %v1413_v52, %v1633_v3  ;;  %v1416_v62 = vld [vmem:[%s1628_s25 + $0x98] sm:$0xff] }
  0x34   : > { %v782_v10 = vadd.f32 %v750_v51, %v681_v58  ;;  %v1054_v9 = vmul.f32 %v1668_v18, %v1479_v46  ;;  %v853_v19 = vmul.f32 %v1656_v14, %v1414_v13  ;;  %v651_v20 = vmul.f32 %v1446_v59, %v1638_v4 }
  0x35   : > { %v1085_v53 = vadd.f32 %v1053_v50, %v984_v45  ;;  %v682_v22 = vadd.f32 %v650_v57, %v581_v12  ;;  %v480_v23 = vadd.f32 %v448_v8, %v379_v15  ;;  %v279_v24 = vmul.f32 %v1412_v32, %v1613_v0 }
  0x36   : > { %v884_v21 = vadd.f32 %v852_v56, %v782_v10  ;;  %v954_v30 = vmul.f32 %v1663_v17, %v1447_v16  ;;  %v348_v31 = vmul.f32 %v1445_v11, %v1618_v1  ;;  %v449_v33 = vmul.f32 %v1478_v27, %v1623_v2  ;;  %v1481_v56 = vld [vmem:[%s1628_s25 + $0x92] sm:$0xff] }
  0x37   : > { %v1124_v29 = vadd.f32 %v1747_v37, %v1085_v53  ;;  %v783_v38 = vadd.f32 %v751_v7, %v682_v22  ;;  %v582_v39 = vadd.f32 %v550_v47, %v480_v23  ;;  %v752_v61 = vmul.f32 %v1479_v46, %v1643_v5  ;;  %v1449_v47 = vld [vmem:[%s1628_s25 + $0x99] sm:$0xff] }
  0x38   : > { %v985_v34 = vadd.f32 %v953_v54, %v884_v21  ;;  %v1055_v32 = vmul.f32 %v1668_v18, %v1480_v60  ;;  %v854_v35 = vmul.f32 %v1656_v14, %v1415_v26  ;;  %v380_v42 = vadd.f32 %v348_v31, %v279_v24  ;;  %v1482_v21 = vld [vmem:[%s1628_s25 + $0x9a] sm:$0xff] }
  0x39   : > { %1157 = vst.msk [vmem:[%s1758_s19 + $0x28] sm:$0xff] %vm1151_vm0, %v1124_v29  ;;  %v551_v11 = vmul.f32 %v1414_v13, %v1633_v3  ;;  %v885_v27 = vadd.f32 %v853_v19, %v783_v38  ;;  %v683_v28 = vadd.f32 %v651_v20, %v582_v39  ;;  %v652_v44 = vmul.f32 %v1447_v16, %v1638_v4  ;;  %v1417_v29 = vld [vmem:[%s1628_s25 + $0xa8] sm:$0xff] }
  0x3a   : > { %v1086_v43 = vadd.f32 %v1054_v9, %v985_v34  ;;  %v481_v49 = vadd.f32 %v449_v33, %v380_v42  ;;  %v280_v50 = vmul.f32 %v1413_v52, %v1613_v0  ;;  %v349_v36 = vmul.f32 %v1446_v59, %v1618_v1  ;;  %v1450_v39 = vld [vmem:[%s1628_s25 + $0xa9] sm:$0xff] }
  0x3b   : > { %v450_v51 = vmul.f32 %v1479_v46, %v1623_v2  ;;  %v986_v25 = vadd.f32 %v954_v30, %v885_v27  ;;  %v784_v40 = vadd.f32 %v752_v61, %v683_v28  ;;  %v955_v41 = vmul.f32 %v1663_v17, %v1448_v48  ;;  %v1483_v28 = vld [vmem:[%s1628_s25 + $0xaa] sm:$0xff] }
  0x3c   : > { %v1125_v55 = vadd.f32 %v1747_v37, %v1086_v43  ;;  %v583_v57 = vadd.f32 %v551_v11, %v481_v49  ;;  %v753_v58 = vmul.f32 %v1480_v60, %v1643_v5  ;;  %v381_v63 = vadd.f32 %v349_v36, %v280_v50  ;;  %v1418_v50 = vld [vmem:[%s1628_s25 + $0xb0] sm:$0xff] }
  0x3d   : > { %v552_v6 = vmul.f32 %v1415_v26, %v1633_v3  ;;  %v1087_v52 = vadd.f32 %v1055_v32, %v986_v25  ;;  %v886_v59 = vadd.f32 %v854_v35, %v784_v40  ;;  %v1056_v45 = vmul.f32 %v1668_v18, %v1481_v56 }
  0x3e   : > { %1158 = vst.msk [vmem:[%s1758_s19 + $0x30] sm:$0xff] %vm1151_vm0, %v1125_v55  ;;  %v855_v54 = vmul.f32 %v1656_v14, %v1416_v62  ;;  %v684_v7 = vadd.f32 %v652_v44, %v583_v57  ;;  %v482_v8 = vadd.f32 %v450_v51, %v381_v63  ;;  %v653_v10 = vmul.f32 %v1448_v48, %v1638_v4 }
  0x3f   : > { %v281_v46 = vmul.f32 %v1414_v13, %v1613_v0  ;;  %v1126_v12 = vadd.f32 %v1747_v37, %v1087_v52  ;;  %v987_v15 = vadd.f32 %v955_v41, %v886_v59  ;;  %v350_v53 = vmul.f32 %v1447_v16, %v1618_v1 }
  0x40   : > { %v451_v9 = vmul.f32 %v1480_v60, %v1623_v2  ;;  %v785_v19 = vadd.f32 %v753_v58, %v684_v7  ;;  %v956_v20 = vmul.f32 %v1663_v17, %v1449_v47  ;;  %v584_v22 = vadd.f32 %v552_v6, %v482_v8  ;;  %v1451_v6 = vld [vmem:[%s1628_s25 + $0xb1] sm:$0xff] }
  0x41   : > { %v754_v23 = vmul.f32 %v1481_v56, %v1643_v5  ;;  %1159 = vst.msk [vmem:[%s1758_s19 + $0x38] sm:$0xff] %vm1151_vm0, %v1126_v12  ;;  %v1088_v24 = vadd.f32 %v1056_v45, %v987_v15  ;;  %v1057_v13 = vmul.f32 %v1668_v18, %v1482_v21  ;;  %v382_v30 = vadd.f32 %v350_v53, %v281_v46  ;;  %v1484_v7 = vld [vmem:[%s1628_s25 + $0xb2] sm:$0xff]  ;;  %v1419_v12 = vld [vmem:[%s1628_s25 + $0xc0] sm:$0xff] }
  0x42   : > { %v553_v16 = vmul.f32 %v1416_v62, %v1633_v3  ;;  %v887_v31 = vadd.f32 %v855_v54, %v785_v19  ;;  %v685_v33 = vadd.f32 %v653_v10, %v584_v22  ;;  %v856_v34 = vmul.f32 %v1656_v14, %v1417_v29  ;;  %v1452_v22 = vld [vmem:[%s1628_s25 + $0xc1] sm:$0xff] }
  0x43   : > { %v654_v38 = vmul.f32 %v1449_v47, %v1638_v4  ;;  %v1127_v60 = vadd.f32 %v1747_v37, %v1088_v24  ;;  %v483_v61 = vadd.f32 %v451_v9, %v382_v30  ;;  %v282_v32 = vmul.f32 %v1415_v26, %v1613_v0 }
  0x44   : > { %v351_v35 = vmul.f32 %v1448_v48, %v1618_v1  ;;  %v988_v42 = vadd.f32 %v956_v20, %v887_v31  ;;  %v786_v11 = vadd.f32 %v754_v23, %v685_v33  ;;  %v957_v43 = vmul.f32 %v1663_v17, %v1450_v39 }
  0x45   : > { %v452_v27 = vmul.f32 %v1481_v56, %v1623_v2  ;;  %1160 = vst.msk [vmem:[%s1758_s19 + $0x40] sm:$0xff] %vm1151_vm0, %v1127_v60  ;;  %v585_v44 = vadd.f32 %v553_v16, %v483_v61  ;;  %v755_v49 = vmul.f32 %v1482_v21, %v1643_v5  ;;  %v554_v51 = vmul.f32 %v1417_v29, %v1633_v3  ;;  %v1420_v61 = vld [vmem:[%s1628_s25 + $0xc8] sm:$0xff] }
  0x46   : > { %v383_v36 = vadd.f32 %v351_v35, %v282_v32  ;;  %v1089_v26 = vadd.f32 %v1057_v13, %v988_v42  ;;  %v888_v48 = vadd.f32 %v856_v34, %v786_v11  ;;  %v1058_v55 = vmul.f32 %v1668_v18, %v1483_v28  ;;  %v1485_v34 = vld [vmem:[%s1628_s25 + $0xc2] sm:$0xff] }
  0x47   : > { %v857_v25 = vmul.f32 %v1656_v14, %v1418_v50  ;;  %v686_v40 = vadd.f32 %v654_v38, %v585_v44  ;;  %v655_v56 = vmul.f32 %v1450_v39, %v1638_v4  ;;  %v283_v57 = vmul.f32 %v1416_v62, %v1613_v0 }
  0x48   : > { %v484_v41 = vadd.f32 %v452_v27, %v383_v36  ;;  %v1128_v58 = vadd.f32 %v1747_v37, %v1089_v26  ;;  %v989_v63 = vadd.f32 %v957_v43, %v888_v48  ;;  %v352_v52 = vmul.f32 %v1449_v47, %v1618_v1 }
  0x49   : > { %v453_v59 = vmul.f32 %v1482_v21, %v1623_v2  ;;  %v787_v45 = vadd.f32 %v755_v49, %v686_v40  ;;  %v958_v54 = vmul.f32 %v1663_v17, %v1451_v6  ;;  %v756_v10 = vmul.f32 %v1483_v28, %v1643_v5  ;;  %v1486_v40 = vld [vmem:[%s1628_s25 + $0xca] sm:$0xff] }
  0x4a   : > { %v586_v8 = vadd.f32 %v554_v51, %v484_v41  ;;  %1161 = vst.msk [vmem:[%s1758_s19 + $0x48] sm:$0xff] %vm1151_vm0, %v1128_v58  ;;  %v1090_v46 = vadd.f32 %v1058_v55, %v989_v63  ;;  %v1059_v62 = vmul.f32 %v1668_v18, %v1484_v7  ;;  %v384_v15 = vadd.f32 %v352_v52, %v283_v57  ;;  %v1453_v51 = vld [vmem:[%s1628_s25 + $0xc9] sm:$0xff]  ;;  %v1421_v58 = vld [vmem:[%s1628_s25 + $0xd8] sm:$0xff] }
  0x4b   : > { %v555_v47 = vmul.f32 %v1418_v50, %v1633_v3  ;;  %v889_v53 = vadd.f32 %v857_v25, %v787_v45  ;;  %v858_v19 = vmul.f32 %v1656_v14, %v1419_v12  ;;  %v656_v20 = vmul.f32 %v1451_v6, %v1638_v4 }
  0x4c   : > { %v687_v9 = vadd.f32 %v655_v56, %v586_v8  ;;  %v1129_v21 = vadd.f32 %v1747_v37, %v1090_v46  ;;  %v485_v23 = vadd.f32 %v453_v59, %v384_v15  ;;  %v284_v24 = vmul.f32 %v1417_v29, %v1613_v0  ;;  %v1454_v8 = vld [vmem:[%s1628_s25 + $0xd9] sm:$0xff] }
  0x4d   : > { %v353_v13 = vmul.f32 %v1450_v39, %v1618_v1  ;;  %v990_v30 = vadd.f32 %v958_v54, %v889_v53  ;;  %v959_v31 = vmul.f32 %v1663_v17, %v1452_v22  ;;  %v454_v33 = vmul.f32 %v1483_v28, %v1623_v2 }
  0x4e   : > { %v788_v16 = vadd.f32 %v756_v10, %v687_v9  ;;  %1162 = vst.msk [vmem:[%s1758_s19 + $0x50] sm:$0xff] %vm1151_vm0, %v1129_v21  ;;  %v587_v38 = vadd.f32 %v555_v47, %v485_v23  ;;  %v757_v60 = vmul.f32 %v1484_v7, %v1643_v5  ;;  %v556_v35 = vmul.f32 %v1419_v12, %v1633_v3  ;;  %v1422_v23 = vld [vmem:[%s1628_s25 + $0xe0] sm:$0xff] }
  0x4f   : > { %v385_v32 = vadd.f32 %v353_v13, %v284_v24  ;;  %v1091_v29 = vadd.f32 %v1059_v62, %v990_v30  ;;  %v1060_v42 = vmul.f32 %v1668_v18, %v1485_v34  ;;  %v859_v11 = vmul.f32 %v1656_v14, %v1420_v61 }
  0x50   : > { %v890_v39 = vadd.f32 %v858_v19, %v788_v16  ;;  %v688_v43 = vadd.f32 %v656_v20, %v587_v38  ;;  %v657_v28 = vmul.f32 %v1452_v22, %v1638_v4  ;;  %v285_v44 = vmul.f32 %v1418_v50, %v1613_v0  ;;  %v1487_v19 = vld [vmem:[%s1628_s25 + $0xda] sm:$0xff] }
  0x51   : > { %v486_v27 = vadd.f32 %v454_v33, %v385_v32  ;;  %v1130_v49 = vadd.f32 %v1747_v37, %v1091_v29  ;;  %v354_v26 = vmul.f32 %v1451_v6, %v1618_v1  ;;  %v455_v48 = vmul.f32 %v1484_v7, %v1623_v2 }
  0x52   : > { %v991_v36 = vadd.f32 %v959_v31, %v890_v39  ;;  %v789_v55 = vadd.f32 %v757_v60, %v688_v43  ;;  %v960_v25 = vmul.f32 %v1663_v17, %v1453_v51  ;;  %v758_v56 = vmul.f32 %v1485_v34, %v1643_v5  ;;  %v1488_v43 = vld [vmem:[%s1628_s25 + $0xe2] sm:$0xff] }
  0x53   : > { %v588_v41 = vadd.f32 %v556_v35, %v486_v27  ;;  %1163 = vst.msk [vmem:[%s1758_s19 + $0x58] sm:$0xff] %vm1151_vm0, %v1130_v49  ;;  %v1061_v50 = vmul.f32 %v1668_v18, %v1486_v40  ;;  %v386_v63 = vadd.f32 %v354_v26, %v285_v44  ;;  %v557_v6 = vmul.f32 %v1420_v61, %v1633_v3  ;;  %v1455_v35 = vld [vmem:[%s1628_s25 + $0xe1] sm:$0xff]  ;;  %v1423_v49 = vld [vmem:[%s1628_s25 + $0xf0] sm:$0xff] }
  0x54   : > { %v1092_v57 = vadd.f32 %v1060_v42, %v991_v36  ;;  %v891_v52 = vadd.f32 %v859_v11, %v789_v55  ;;  %v860_v45 = vmul.f32 %v1656_v14, %v1421_v58  ;;  %v658_v54 = vmul.f32 %v1453_v51, %v1638_v4 }
  0x55   : > { %v689_v59 = vadd.f32 %v657_v28, %v588_v41  ;;  %v487_v10 = vadd.f32 %v455_v48, %v386_v63  ;;  %v286_v46 = vmul.f32 %v1419_v12, %v1613_v0  ;;  %v355_v62 = vmul.f32 %v1452_v22, %v1618_v1  ;;  %v1456_v41 = vld [vmem:[%s1628_s25 + $0xf1] sm:$0xff] }
  0x56   : > { %v1131_v7 = vadd.f32 %v1747_v37, %v1092_v57  ;;  %v992_v15 = vadd.f32 %v960_v25, %v891_v52  ;;  %v961_v53 = vmul.f32 %v1663_v17, %v1454_v8  ;;  %v456_v9 = vmul.f32 %v1485_v34, %v1623_v2 }
  0x57   : > { %v790_v47 = vadd.f32 %v758_v56, %v689_v59  ;;  %v589_v20 = vadd.f32 %v557_v6, %v487_v10  ;;  %v759_v21 = vmul.f32 %v1486_v40, %v1643_v5  ;;  %v387_v24 = vadd.f32 %v355_v62, %v286_v46  ;;  %v1424_v10 = vld [vmem:[%s1628_s25 + $0xf8] sm:$0xff] }
  0x58   : > { %1164 = vst.msk [vmem:[%s1758_s19 + $0x60] sm:$0xff] %vm1151_vm0, %v1131_v7  ;;  %v558_v13 = vmul.f32 %v1421_v58, %v1633_v3  ;;  %v1093_v12 = vadd.f32 %v1061_v50, %v992_v15  ;;  %v1062_v30 = vmul.f32 %v1668_v18, %v1487_v19  ;;  %v861_v16 = vmul.f32 %v1656_v14, %v1422_v23 }
  0x59   : > { %v892_v22 = vadd.f32 %v860_v45, %v790_v47  ;;  %v690_v31 = vadd.f32 %v658_v54, %v589_v20  ;;  %v488_v33 = vadd.f32 %v456_v9, %v387_v24  ;;  %v659_v34 = vmul.f32 %v1454_v8, %v1638_v4  ;;  %v1489_v45 = vld [vmem:[%s1628_s25 + $0xf2] sm:$0xff] }
  0x5a   : > { %v287_v38 = vmul.f32 %v1420_v61, %v1613_v0  ;;  %v1132_v60 = vadd.f32 %v1747_v37, %v1093_v12  ;;  %v356_v29 = vmul.f32 %v1453_v51, %v1618_v1  ;;  %v457_v39 = vmul.f32 %v1486_v40, %v1623_v2 }
  0x5b   : > { %v993_v32 = vadd.f32 %v961_v53, %v892_v22  ;;  %v791_v42 = vadd.f32 %v759_v21, %v690_v31  ;;  %v962_v11 = vmul.f32 %v1663_v17, %v1455_v35  ;;  %v590_v27 = vadd.f32 %v558_v13, %v488_v33  ;;  %v1457_v13 = vld [vmem:[%s1628_s25 + $0xf9] sm:$0xff] }
  0x5c   : > { %v760_v28 = vmul.f32 %v1487_v19, %v1643_v5  ;;  %1165 = vst.msk [vmem:[%s1758_s19 + $0x68] sm:$0xff] %vm1151_vm0, %v1132_v60  ;;  %v1063_v61 = vmul.f32 %v1668_v18, %v1488_v43  ;;  %v388_v36 = vadd.f32 %v356_v29, %v287_v38  ;;  %v559_v51 = vmul.f32 %v1422_v23, %v1633_v3  ;;  %v1490_v31 = vld [vmem:[%s1628_s25 + $0xfa] sm:$0xff]  ;;  %v1425_v60 = vld [vmem:[%s1628_s25 + $0x108] sm:$0xff] }
  0x5d   : > { %v1094_v44 = vadd.f32 %v1062_v30, %v993_v32  ;;  %v893_v26 = vadd.f32 %v861_v16, %v791_v42  ;;  %v691_v48 = vadd.f32 %v659_v34, %v590_v27  ;;  %v862_v55 = vmul.f32 %v1656_v14, %v1423_v49  ;;  %v1458_v27 = vld [vmem:[%s1628_s25 + $0x109] sm:$0xff] }
  0x5e   : > { %v660_v25 = vmul.f32 %v1455_v35, %v1638_v4  ;;  %v489_v56 = vadd.f32 %v457_v39, %v388_v36  ;;  %v288_v57 = vmul.f32 %v1421_v58, %v1613_v0  ;;  %v357_v50 = vmul.f32 %v1454_v8, %v1618_v1 }
  0x5f   : > { %v1133_v40 = vadd.f32 %v1747_v37, %v1094_v44  ;;  %v994_v63 = vadd.f32 %v962_v11, %v893_v26  ;;  %v792_v6 = vadd.f32 %v760_v28, %v691_v48  ;;  %v963_v52 = vmul.f32 %v1663_v17, %v1456_v41 }
  0x60   : > { %v458_v59 = vmul.f32 %v1487_v19, %v1623_v2  ;;  %v591_v54 = vadd.f32 %v559_v51, %v489_v56  ;;  %v761_v7 = vmul.f32 %v1488_v43, %v1643_v5  ;;  %v389_v46 = vadd.f32 %v357_v50, %v288_v57  ;;  %v1426_v56 = vld [vmem:[%s1628_s25 + $0x110] sm:$0xff] }
  0x61   : > { %1166 = vst.msk [vmem:[%s1758_s19 + $0x70] sm:$0xff] %vm1151_vm0, %v1133_v40  ;;  %v560_v62 = vmul.f32 %v1423_v49, %v1633_v3  ;;  %v1095_v58 = vadd.f32 %v1063_v61, %v994_v63  ;;  %v894_v8 = vadd.f32 %v862_v55, %v792_v6  ;;  %v1064_v15 = vmul.f32 %v1668_v18, %v1489_v45  ;;  %v1491_v55 = vld [vmem:[%s1628_s25 + $0x10a] sm:$0xff] }
  0x62   : > { %v863_v47 = vmul.f32 %v1656_v14, %v1424_v10  ;;  %v692_v53 = vadd.f32 %v660_v25, %v591_v54  ;;  %v490_v9 = vadd.f32 %v458_v59, %v389_v46  ;;  %v661_v19 = vmul.f32 %v1456_v41, %v1638_v4 }
  0x63   : > { %v289_v20 = vmul.f32 %v1422_v23, %v1613_v0  ;;  %v1134_v21 = vadd.f32 %v1747_v37, %v1095_v58  ;;  %v995_v24 = vadd.f32 %v963_v52, %v894_v8  ;;  %v358_v12 = vmul.f32 %v1455_v35, %v1618_v1 }
  0x64   : > { %v459_v22 = vmul.f32 %v1488_v43, %v1623_v2  ;;  %v793_v30 = vadd.f32 %v761_v7, %v692_v53  ;;  %v964_v16 = vmul.f32 %v1663_v17, %v1457_v13  ;;  %v592_v33 = vadd.f32 %v560_v62, %v490_v9  ;;  %v1459_v62 = vld [vmem:[%s1628_s25 + $0x111] sm:$0xff] }
  0x65   : > { %v762_v34 = vmul.f32 %v1489_v45, %v1643_v5  ;;  %1167 = vst.msk [vmem:[%s1758_s19 + $0x78] sm:$0xff] %vm1151_vm0, %v1134_v21  ;;  %v1096_v38 = vadd.f32 %v1064_v15, %v995_v24  ;;  %v1065_v23 = vmul.f32 %v1668_v18, %v1490_v31  ;;  %v390_v32 = vadd.f32 %v358_v12, %v289_v20  ;;  %v1492_v53 = vld [vmem:[%s1628_s25 + $0x112] sm:$0xff]  ;;  %v1427_v21 = vld [vmem:[%s1628_s25 + $0x120] sm:$0xff] }
  0x66   : > { %v561_v35 = vmul.f32 %v1424_v10, %v1633_v3  ;;  %v895_v29 = vadd.f32 %v863_v47, %v793_v30  ;;  %v693_v39 = vadd.f32 %v661_v19, %v592_v33  ;;  %v864_v42 = vmul.f32 %v1656_v14, %v1425_v60  ;;  %v1460_v33 = vld [vmem:[%s1628_s25 + $0x121] sm:$0xff] }
  0x67   : > { %v662_v11 = vmul.f32 %v1457_v13, %v1638_v4  ;;  %v1135_v43 = vadd.f32 %v1747_v37, %v1096_v38  ;;  %v491_v28 = vadd.f32 %v459_v22, %v390_v32  ;;  %v290_v44 = vmul.f32 %v1423_v49, %v1613_v0 }
  0x68   : > { %v359_v61 = vmul.f32 %v1456_v41, %v1618_v1  ;;  %v996_v36 = vadd.f32 %v964_v16, %v895_v29  ;;  %v794_v51 = vadd.f32 %v762_v34, %v693_v39  ;;  %v965_v26 = vmul.f32 %v1663_v17, %v1458_v27 }
  0x69   : > { %v460_v48 = vmul.f32 %v1489_v45, %v1623_v2  ;;  %1168 = vst.msk [vmem:[%s1758_s19 + $0x80] sm:$0xff] %vm1151_vm0, %v1135_v43  ;;  %v593_v25 = vadd.f32 %v561_v35, %v491_v28  ;;  %v763_v40 = vmul.f32 %v1490_v31, %v1643_v5  ;;  %v562_v50 = vmul.f32 %v1425_v60, %v1633_v3  ;;  %v1428_v28 = vld [vmem:[%s1628_s25 + $0x128] sm:$0xff] }
  0x6a   : > { %v391_v57 = vadd.f32 %v359_v61, %v290_v44  ;;  %v1097_v49 = vadd.f32 %v1065_v23, %v996_v36  ;;  %v896_v41 = vadd.f32 %v864_v42, %v794_v51  ;;  %v1066_v63 = vmul.f32 %v1668_v18, %v1491_v55  ;;  %v1493_v42 = vld [vmem:[%s1628_s25 + $0x122] sm:$0xff] }
  0x6b   : > { %v865_v6 = vmul.f32 %v1656_v14, %v1426_v56  ;;  %v694_v52 = vadd.f32 %v662_v11, %v593_v25  ;;  %v663_v45 = vmul.f32 %v1458_v27, %v1638_v4  ;;  %v291_v54 = vmul.f32 %v1424_v10, %v1613_v0 }
  0x6c   : > { %v492_v59 = vadd.f32 %v460_v48, %v391_v57  ;;  %v1136_v7 = vadd.f32 %v1747_v37, %v1097_v49  ;;  %v997_v46 = vadd.f32 %v965_v26, %v896_v41  ;;  %v360_v58 = vmul.f32 %v1457_v13, %v1618_v1 }
  0x6d   : > { %v461_v8 = vmul.f32 %v1490_v31, %v1623_v2  ;;  %v795_v15 = vadd.f32 %v763_v40, %v694_v52  ;;  %v966_v47 = vmul.f32 %v1663_v17, %v1459_v62  ;;  %v764_v19 = vmul.f32 %v1491_v55, %v1643_v5 }
  0x6e   : > { %v594_v9 = vadd.f32 %v562_v50, %v492_v59  ;;  %1169 = vst.msk [vmem:[%s1758_s19 + $0x88] sm:$0xff] %vm1151_vm0, %v1136_v7  ;;  %v1098_v20 = vadd.f32 %v1066_v63, %v997_v46  ;;  %v1067_v10 = vmul.f32 %v1668_v18, %v1492_v53  ;;  %v392_v24 = vadd.f32 %v360_v58, %v291_v54  ;;  %v1461_v50 = vld [vmem:[%s1628_s25 + $0x129] sm:$0xff]  ;;  %v1462_v58 = vld [vmem:[%s1628_s25 + $0x139] sm:$0xff] }
  0x6f   : > { %v563_v13 = vmul.f32 %v1426_v56, %v1633_v3  ;;  %v897_v12 = vadd.f32 %v865_v6, %v795_v15  ;;  %v866_v30 = vmul.f32 %v1656_v14, %v1427_v21  ;;  %v664_v16 = vmul.f32 %v1459_v62, %v1638_v4  ;;  %v1494_v6 = vld [vmem:[%s1628_s25 + $0x12a] sm:$0xff]  ;;  %v2073_v15 = vld [vmem:[%s2263_s1] ss:$0 sm:$0xff] }
  0x70   : > { %v695_v22 = vadd.f32 %v663_v45, %v594_v9  ;;  %v1137_v31 = vadd.f32 %v1747_v37, %v1098_v20  ;;  %v493_v34 = vadd.f32 %v461_v8, %v392_v24  ;;  %v292_v38 = vmul.f32 %v1425_v60, %v1613_v0 }
  0x71   : > { %v361_v23 = vmul.f32 %v1458_v27, %v1618_v1  ;;  %v998_v32 = vadd.f32 %v966_v47, %v897_v12  ;;  %v967_v29 = vmul.f32 %v1663_v17, %v1460_v33  ;;  %v462_v39 = vmul.f32 %v1491_v55, %v1623_v2  ;;  %v2079_v47 = vld [vmem:[%s2263_s1 + $0x1] ss:$0 sm:$0xff]  ;;  %v2095_v12 = vld [vmem:[%s2263_s1 + $0x5] ss:$0 sm:$0xff] }
  0x72   : > { %v796_v35 = vadd.f32 %v764_v19, %v695_v22  ;;  %1170 = vst.msk [vmem:[%s1758_s19 + $0x90] sm:$0xff] %vm1151_vm0, %v1137_v31  ;;  %v595_v11 = vadd.f32 %v563_v13, %v493_v34  ;;  %v765_v43 = vmul.f32 %v1492_v53, %v1643_v5  ;;  %v564_v61 = vmul.f32 %v1427_v21, %v1633_v3  ;;  %v2104_v34 = vld [vmem:[%s2263_s1 + $0x8] ss:$0 sm:$0xff] }
  0x73   : > { %v393_v44 = vadd.f32 %v361_v23, %v292_v38  ;;  %v1099_v60 = vadd.f32 %v1067_v10, %v998_v32  ;;  %v1068_v36 = vmul.f32 %v1668_v18, %v1493_v42  ;;  %v867_v51 = vmul.f32 %v1656_v14, %v1428_v28  ;;  %v2086_v10 = vld [vmem:[%s2263_s1 + $0x2] ss:$0 sm:$0xff]  ;;  %v2110_v23 = vld [vmem:[%s2263_s1 + $0x6] ss:$0 sm:$0xff] }
  0x74   : > { %v898_v27 = vadd.f32 %v866_v30, %v796_v35  ;;  %v696_v26 = vadd.f32 %v664_v16, %v595_v11  ;;  %v665_v55 = vmul.f32 %v1460_v33, %v1638_v4  ;;  %v293_v25 = vmul.f32 %v1426_v56, %v1613_v0  ;;  %v2052_v56 = vld [vmem:[%s1628_s25 + $0x138] sm:$0xff] }
  0x75   : > { %v494_v48 = vadd.f32 %v462_v39, %v393_v44  ;;  %v1138_v40 = vadd.f32 %v1747_v37, %v1099_v60  ;;  %v362_v3 = vmul.f32 %v1459_v62, %v1618_v1  ;;  %v463_v49 = vmul.f32 %v1492_v53, %v1623_v2  ;;  %v2057_v1 = vld [vmem:[%s2263_s1 + $0x3] ss:$0 sm:$0xff] }
  0x76   : > { %v999_v57 = vadd.f32 %v967_v29, %v898_v27  ;;  %v797_v41 = vadd.f32 %v765_v43, %v696_v26  ;;  %v968_v63 = vmul.f32 %v1663_v17, %v1461_v50  ;;  %v766_v59 = vmul.f32 %v1493_v42, %v1643_v5  ;;  %v1463_v44 = vld [vmem:[%s1628_s25 + $0x141] sm:$0xff] }
  0x77   : > { %v596_v52 = vadd.f32 %v564_v61, %v494_v48  ;;  %1171 = vst.msk [vmem:[%s1758_s19 + $0x98] sm:$0xff] %vm1151_vm0, %v1138_v40  ;;  %v1069_v0 = vmul.f32 %v1668_v18, %v1494_v6  ;;  %v394_v45 = vadd.f32 %v362_v3, %v293_v25  ;;  %v565_v2 = vmul.f32 %v2057_v1, %v1428_v28  ;;  %v2065_v18 = vld [vmem:[%s2263_s1 + $0x4] ss:$0 sm:$0xff]  ;;  %v1431_v40 = vld [vmem:[%s1628_s25 + $0x150] sm:$0xff] }
  0x78   : > { %v1100_v4 = vadd.f32 %v1068_v36, %v999_v57  ;;  %v899_v54 = vadd.f32 %v867_v51, %v797_v41  ;;  %v868_v5 = vmul.f32 %v1656_v14, %v2052_v56  ;;  %v666_v46 = vmul.f32 %v2065_v18, %v1461_v50  ;;  %v2122_v36 = vld [vmem:[%s2263_s1 + $0x7] ss:$0 sm:$0xff] }
  0x79   : > { %v697_v7 = vadd.f32 %v665_v55, %v596_v52  ;;  %v495_v8 = vadd.f32 %v463_v49, %v394_v45  ;;  %v294_v14 = vmul.f32 %v2073_v15, %v1427_v21  ;;  %v363_v53 = vmul.f32 %v2079_v47, %v1460_v33  ;;  %v1495_v21 = vld [vmem:[%s1628_s25 + $0x13a] sm:$0xff]  ;;  %v1496_v26 = vld [vmem:[%s1628_s25 + $0x142] sm:$0xff]  ;;  %v1464_v52 = vld [vmem:[%s1628_s25 + $0x151] sm:$0xff] }
  0x7a   : > { %v1139_v62 = vadd.f32 %v1747_v37, %v1100_v4  ;;  %v1000_v9 = vadd.f32 %v968_v63, %v899_v54  ;;  %v969_v20 = vmul.f32 %v1663_v17, %v1462_v58  ;;  %v464_v24 = vmul.f32 %v2086_v10, %v1493_v42  ;;  %v1430_v17 = vld [vmem:[%s1628_s25 + $0x140] sm:$0xff] }
  0x7b   : > { %v798_v19 = vadd.f32 %v766_v59, %v697_v7  ;;  %v597_v13 = vadd.f32 %v565_v2, %v495_v8  ;;  %v767_v22 = vmul.f32 %v2095_v12, %v1494_v6  ;;  %v395_v30 = vadd.f32 %v363_v53, %v294_v14  ;;  %v1432_v8 = vld [vmem:[%s1628_s25 + $0x158] sm:$0xff] }
  0x7c   : > { %1172 = vst.msk [vmem:[%s1758_s19 + $0xa0] sm:$0xff] %vm1151_vm0, %v1139_v62  ;;  %v566_v16 = vmul.f32 %v2057_v1, %v2052_v56  ;;  %v1101_v31 = vadd.f32 %v1069_v0, %v1000_v9  ;;  %v1070_v38 = vmul.f32 %v2104_v34, %v1495_v21  ;;  %v869_v32 = vmul.f32 %v2110_v23, %v1430_v17 }
  0x7d   : > { %v900_v33 = vadd.f32 %v868_v5, %v798_v19  ;;  %v698_v35 = vadd.f32 %v666_v46, %v597_v13  ;;  %v496_v29 = vadd.f32 %v464_v24, %v395_v30  ;;  %v667_v39 = vmul.f32 %v2065_v18, %v1462_v58  ;;  %v1497_v5 = vld [vmem:[%s1628_s25 + $0x152] sm:$0xff] }
  0x7e   : > { %v295_v42 = vmul.f32 %v2073_v15, %v1428_v28  ;;  %v1140_v11 = vadd.f32 %v1747_v37, %v1101_v31  ;;  %v364_v61 = vmul.f32 %v2079_v47, %v1461_v50  ;;  %v465_v60 = vmul.f32 %v2086_v10, %v1494_v6 }
  0x7f   : > { %v1001_v43 = vadd.f32 %v969_v20, %v900_v33  ;;  %v799_v27 = vadd.f32 %v767_v22, %v698_v35  ;;  %v970_v51 = vmul.f32 %v2122_v36, %v1463_v44  ;;  %v598_v48 = vadd.f32 %v566_v16, %v496_v29  ;;  %v1465_v16 = vld [vmem:[%s1628_s25 + $0x159] sm:$0xff] }
  0x80   : > { %v768_v28 = vmul.f32 %v2095_v12, %v1495_v21  ;;  %1173 = vst.msk [vmem:[%s1758_s19 + $0xa8] sm:$0xff] %vm1151_vm0, %v1140_v11  ;;  %v1071_v25 = vmul.f32 %v2104_v34, %v1496_v26  ;;  %v396_v57 = vadd.f32 %v364_v61, %v295_v42  ;;  %v567_v50 = vmul.f32 %v2057_v1, %v1430_v17  ;;  %v1498_v35 = vld [vmem:[%s1628_s25 + $0x15a] sm:$0xff] }
  0x81   : > { %v1102_v55 = vadd.f32 %v1070_v38, %v1001_v43  ;;  %v901_v3 = vadd.f32 %v869_v32, %v799_v27  ;;  %v699_v49 = vadd.f32 %v667_v39, %v598_v48  ;;  %v870_v41 = vmul.f32 %v2110_v23, %v1431_v40  ;;  %v1466_v48 = vld [vmem:[%s1628_s25 + $0x169] sm:$0xff] }
  0x82   : > { %v668_v63 = vmul.f32 %v2065_v18, %v1463_v44  ;;  %v497_v59 = vadd.f32 %v465_v60, %v396_v57  ;;  %v296_v4 = vmul.f32 %v2073_v15, %v2052_v56  ;;  %v365_v0 = vmul.f32 %v2079_v47, %v1462_v58 }
  0x83   : > { %v1141_v6 = vadd.f32 %v1747_v37, %v1102_v55  ;;  %v1002_v45 = vadd.f32 %v970_v51, %v901_v3  ;;  %v800_v2 = vadd.f32 %v768_v28, %v699_v49  ;;  %v971_v54 = vmul.f32 %v2122_v36, %v1464_v52  ;;  %v2168_v51 = vld [vmem:[%s2264_s2] ss:$0 sm:$0xff] }
  0x84   : > { %v466_v7 = vmul.f32 %v2086_v10, %v1495_v21  ;;  %v599_v46 = vadd.f32 %v567_v50, %v497_v59  ;;  %v769_v62 = vmul.f32 %v2095_v12, %v1496_v26  ;;  %v397_v14 = vadd.f32 %v365_v0, %v296_v4  ;;  %v1434_v59 = vld [vmem:[%s1628_s25 + $0x170] sm:$0xff] }
  0x85   : > { %1174 = vst.msk [vmem:[%s1758_s19 + $0xb0] sm:$0xff] %vm1151_vm0, %v1141_v6  ;;  %v568_v53 = vmul.f32 %v2057_v1, %v1431_v40  ;;  %v1103_v56 = vadd.f32 %v1071_v25, %v1002_v45  ;;  %v902_v58 = vadd.f32 %v870_v41, %v800_v2  ;;  %v1072_v9 = vmul.f32 %v2104_v34, %v1497_v5  ;;  %v1499_v41 = vld [vmem:[%s1628_s25 + $0x16a] sm:$0xff] }
  0x86   : > { %v871_v19 = vmul.f32 %v2110_v23, %v1432_v8  ;;  %v700_v20 = vadd.f32 %v668_v63, %v599_v46  ;;  %v498_v24 = vadd.f32 %v466_v7, %v397_v14  ;;  %v669_v21 = vmul.f32 %v2065_v18, %v1464_v52 }
  0x87   : > { %v297_v13 = vmul.f32 %v2073_v15, %v1430_v17  ;;  %v1142_v22 = vadd.f32 %v1747_v37, %v1103_v56  ;;  %v1003_v30 = vadd.f32 %v971_v54, %v902_v58  ;;  %v366_v31 = vmul.f32 %v2079_v47, %v1463_v44  ;;  %v1433_v37 = vld [vmem:[%s1628_s25 + $0x168] sm:$0xff] }
  0x88   : > { %v467_v33 = vmul.f32 %v2086_v10, %v1496_v26  ;;  %v801_v38 = vadd.f32 %v769_v62, %v700_v20  ;;  %v972_v32 = vmul.f32 %v2122_v36, %v1465_v16  ;;  %v600_v29 = vadd.f32 %v568_v53, %v498_v24  ;;  %v1467_v53 = vld [vmem:[%s1628_s25 + $0x171] sm:$0xff] }
  0x89   : > { %v770_v39 = vmul.f32 %v2095_v12, %v1497_v5  ;;  %1175 = vst.msk [vmem:[%s1758_s19 + $0xb8] sm:$0xff] %vm1151_vm0, %v1142_v22  ;;  %v1104_v42 = vadd.f32 %v1072_v9, %v1003_v30  ;;  %v1073_v17 = vmul.f32 %v2104_v34, %v1498_v35  ;;  %v398_v11 = vadd.f32 %v366_v31, %v297_v13  ;;  %v1500_v20 = vld [vmem:[%s1628_s25 + $0x172] sm:$0xff]  ;;  %v1435_v22 = vld [vmem:[%s1628_s25 + $0x180] sm:$0xff] }
  0x8a   : > { %v569_v43 = vmul.f32 %v2057_v1, %v1432_v8  ;;  %v903_v44 = vadd.f32 %v871_v19, %v801_v38  ;;  %v701_v61 = vadd.f32 %v669_v21, %v600_v29  ;;  %v872_v60 = vmul.f32 %v2110_v23, %v1433_v37  ;;  %v1468_v29 = vld [vmem:[%s1628_s25 + $0x181] sm:$0xff] }
  0x8b   : > { %v670_v27 = vmul.f32 %v2065_v18, %v1465_v16  ;;  %v1143_v26 = vadd.f32 %v2168_v51, %v1104_v42  ;;  %v499_v28 = vadd.f32 %v467_v33, %v398_v11  ;;  %v298_v55 = vmul.f32 %v2073_v15, %v1431_v40 }
  0x8c   : > { %v367_v25 = vmul.f32 %v2079_v47, %v1464_v52  ;;  %v1004_v57 = vadd.f32 %v972_v32, %v903_v44  ;;  %v802_v50 = vadd.f32 %v770_v39, %v701_v61  ;;  %v973_v3 = vmul.f32 %v2122_v36, %v1466_v48 }
  0x8d   : > { %v468_v49 = vmul.f32 %v2086_v10, %v1497_v5  ;;  %1176 = vst.msk [vmem:[%s1758_s19 + $0xc0] sm:$0xff] %vm1151_vm0, %v1143_v26  ;;  %v601_v63 = vadd.f32 %v569_v43, %v499_v28  ;;  %v771_v6 = vmul.f32 %v2095_v12, %v1498_v35  ;;  %v570_v0 = vmul.f32 %v2057_v1, %v1433_v37  ;;  %v1436_v28 = vld [vmem:[%s1628_s25 + $0x188] sm:$0xff] }
  0x8e   : > { %v399_v4 = vadd.f32 %v367_v25, %v298_v55  ;;  %v1105_v40 = vadd.f32 %v1073_v17, %v1004_v57  ;;  %v904_v52 = vadd.f32 %v872_v60, %v802_v50  ;;  %v1074_v45 = vmul.f32 %v2104_v34, %v1499_v41  ;;  %v1501_v60 = vld [vmem:[%s1628_s25 + $0x182] sm:$0xff] }
  0x8f   : > { %v873_v2 = vmul.f32 %v2110_v23, %v1434_v59  ;;  %v702_v54 = vadd.f32 %v670_v27, %v601_v63  ;;  %v671_v5 = vmul.f32 %v2065_v18, %v1466_v48  ;;  %v299_v46 = vmul.f32 %v2073_v15, %v1432_v8 }
  0x90   : > { %v500_v7 = vadd.f32 %v468_v49, %v399_v4  ;;  %v1144_v62 = vadd.f32 %v2168_v51, %v1105_v40  ;;  %v1005_v14 = vadd.f32 %v973_v3, %v904_v52  ;;  %v368_v56 = vmul.f32 %v2079_v47, %v1465_v16  ;;  %v1437_v40 = vld [vmem:[%s1628_s25 + $0x198] sm:$0xff] }
  0x91   : > { %v469_v58 = vmul.f32 %v2086_v10, %v1498_v35  ;;  %v803_v9 = vadd.f32 %v771_v6, %v702_v54  ;;  %v974_v19 = vmul.f32 %v2122_v36, %v1467_v53  ;;  %v772_v21 = vmul.f32 %v2095_v12, %v1499_v41 }
  0x92   : > { %v602_v24 = vadd.f32 %v570_v0, %v500_v7  ;;  %1177 = vst.msk [vmem:[%s1758_s19 + $0xc8] sm:$0xff] %vm1151_vm0, %v1144_v62  ;;  %v1106_v13 = vadd.f32 %v1074_v45, %v1005_v14  ;;  %v1075_v8 = vmul.f32 %v2104_v34, %v1500_v20  ;;  %v400_v30 = vadd.f32 %v368_v56, %v299_v46  ;;  %v1469_v0 = vld [vmem:[%s1628_s25 + $0x189] sm:$0xff] }
  0x93   : > { %v571_v16 = vmul.f32 %v2057_v1, %v1434_v59  ;;  %v905_v31 = vadd.f32 %v873_v2, %v803_v9  ;;  %v874_v38 = vmul.f32 %v2110_v23, %v1435_v22  ;;  %v672_v32 = vmul.f32 %v2065_v18, %v1467_v53  ;;  %v1503_v9 = vld [vmem:[%s1628_s25 + $0x19a] sm:$0xff] }
  0x94   : > { %v703_v33 = vadd.f32 %v671_v5, %v602_v24  ;;  %v1145_v35 = vadd.f32 %v2168_v51, %v1106_v13  ;;  %v501_v39 = vadd.f32 %v469_v58, %v400_v30  ;;  %v300_v42 = vmul.f32 %v2073_v15, %v1433_v37 }
  0x95   : > { %v369_v17 = vmul.f32 %v2079_v47, %v1466_v48  ;;  %v1006_v11 = vadd.f32 %v974_v19, %v905_v31  ;;  %v975_v44 = vmul.f32 %v2122_v36, %v1468_v29  ;;  %v470_v61 = vmul.f32 %v2086_v10, %v1499_v41 }
  0x96   : > { %v804_v43 = vadd.f32 %v772_v21, %v703_v33  ;;  %1178 = vst.msk [vmem:[%s1758_s19 + $0xd0] sm:$0xff] %vm1151_vm0, %v1145_v35  ;;  %v603_v27 = vadd.f32 %v571_v16, %v501_v39  ;;  %v773_v26 = vmul.f32 %v2095_v12, %v1500_v20  ;;  %v572_v37 = vmul.f32 %v2057_v1, %v1435_v22  ;;  %v1471_v33 = vld [vmem:[%s1628_s25 + $0x1a1] sm:$0xff] }
  0x97   : > { %v401_v55 = vadd.f32 %v369_v17, %v300_v42  ;;  %v1107_v25 = vadd.f32 %v1075_v8, %v1006_v11  ;;  %v1076_v57 = vmul.f32 %v2104_v34, %v1501_v60  ;;  %v875_v50 = vmul.f32 %v2110_v23, %v1436_v28 }
  0x98   : > { %v906_v48 = vadd.f32 %v874_v38, %v804_v43  ;;  %v704_v3 = vadd.f32 %v672_v32, %v603_v27  ;;  %v673_v41 = vmul.f32 %v2065_v18, %v1468_v29  ;;  %v301_v63 = vmul.f32 %v2073_v15, %v1434_v59  ;;  %v1502_v15 = vld [vmem:[%s1628_s25 + $0x18a] sm:$0xff]  ;;  %v1470_v59 = vld [vmem:[%s1628_s25 + $0x199] sm:$0xff]  ;;  %v1504_v29 = vld [vmem:[%s1628_s25 + $0x1a2] sm:$0xff] }
  0x99   : > { %v502_v49 = vadd.f32 %v470_v61, %v401_v55  ;;  %v1146_v6 = vadd.f32 %v2168_v51, %v1107_v25  ;;  %v370_v52 = vmul.f32 %v2079_v47, %v1467_v53  ;;  %v471_v45 = vmul.f32 %v2086_v10, %v1500_v20 }
  0x9a   : > { %v1007_v4 = vadd.f32 %v975_v44, %v906_v48  ;;  %v805_v2 = vadd.f32 %v773_v26, %v704_v3  ;;  %v976_v54 = vmul.f32 %v2122_v36, %v1469_v0  ;;  %v774_v5 = vmul.f32 %v2095_v12, %v1501_v60 }
  0x9b   : > { %v604_v7 = vadd.f32 %v572_v37, %v502_v49  ;;  %1179 = vst.msk [vmem:[%s1758_s19 + $0xd8] sm:$0xff] %vm1151_vm0, %v1146_v6  ;;  %v402_v62 = vadd.f32 %v370_v52, %v301_v63  ;;  %v573_v14 = vmul.f32 %v2057_v1, %v1436_v28  ;;  %v1077_v10 = vmul.f32 %v2104_v34, %v1502_v15  ;;  %v1438_v1 = vld [vmem:[%s1628_s25 + $0x1a0] sm:$0xff] }
  0x9c   : > { %v1108_v46 = vadd.f32 %v1076_v57, %v1007_v4  ;;  %v907_v47 = vadd.f32 %v875_v50, %v805_v2  ;;  %v876_v56 = vmul.f32 %v2110_v23, %v1437_v40  ;;  %v674_v20 = vmul.f32 %v2065_v18, %v1469_v0 }
  0x9d   : > { %v705_v53 = vadd.f32 %v673_v41, %v604_v7  ;;  %v503_v19 = vadd.f32 %v471_v45, %v402_v62  ;;  %v977_v13 = vmul.f32 %v2122_v36, %v1470_v59  ;;  %v775_v22 = vmul.f32 %v2095_v12, %v1502_v15 }
  0x9e   : > { %v1147_v58 = vadd.f32 %v2168_v51, %v1108_v46  ;;  %v1008_v24 = vadd.f32 %v976_v54, %v907_v47  ;;  %v1078_v31 = vmul.f32 %v2104_v34, %v1503_v9  ;;  %v877_v18 = vmul.f32 %v2110_v23, %v1438_v1 }
  0x9f   : > { %v806_v21 = vadd.f32 %v774_v5, %v705_v53  ;;  %v605_v8 = vadd.f32 %v573_v14, %v503_v19  ;;  %v978_v42 = vmul.f32 %v2122_v36, %v1471_v33  ;;  %v1079_v11 = vmul.f32 %v2104_v34, %v1504_v29 }
  0xa0   : > { %1180 = vst.msk [vmem:[%s1758_s19 + $0xe0] sm:$0xff] %vm1151_vm0, %v1147_v58  ;;  %v1109_v30 = vadd.f32 %v1077_v10, %v1008_v24 }
  0xa1   : > { %v908_v16 = vadd.f32 %v876_v56, %v806_v21  ;;  %v706_v38 = vadd.f32 %v674_v20, %v605_v8 }
  0xa2   : > { %v1148_v32 = vadd.f32 %v2168_v51, %v1109_v30 }
  0xa3   : > { %v1009_v35 = vadd.f32 %v977_v13, %v908_v16  ;;  %v807_v39 = vadd.f32 %v775_v22, %v706_v38 }
  0xa4   : > { %1181 = vst.msk [vmem:[%s1758_s19 + $0xe8] sm:$0xff] %vm1151_vm0, %v1148_v32 }
  0xa5   : > { %v1110_v12 = vadd.f32 %v1078_v31, %v1009_v35  ;;  %v909_v17 = vadd.f32 %v877_v18, %v807_v39 }
  0xa7   : > { %v1149_v43 = vadd.f32 %v2168_v51, %v1110_v12  ;;  %v1010_v44 = vadd.f32 %v978_v42, %v909_v17 }
  0xa9   : > { %1182 = vst.msk [vmem:[%s1758_s19 + $0xf0] sm:$0xff] %vm1151_vm0, %v1149_v43  ;;  %v1111_v61 = vadd.f32 %v1079_v11, %v1010_v44 }
  0xab   : > { %v1150_v23 = vadd.f32 %v2168_v51, %v1111_v61 }
  0xad   : > { %1183 = vst.msk [vmem:[%s1758_s19 + $0xf8] sm:$0xff] %vm1151_vm0, %v1150_v23 }
  0xae PF: > { %s13_s14 = sadd.s32 1, %s1567_s14   ;;  %s2266_s12 = smov %s1563_s13 }
  0xaf   : > { %p10_p5 = scmp.ge.s32.totalorder %s13_s14, 4   ;;  %s2267_s13 = smov %s2269_s15 }
  0xb1   :  { %12 = sbr.rel (!%p10_p5) target bundleno = 2 (0x2), region = 70 }

</bundles_post_ra>
